<compile_context>
chip_gen: v5e
topology: v5e:2x2
jax: 0.10.0
libtpu: 0.0.40
codegen_flags: <defaults>
</compile_context>

<pallas_src>
import functools
import math

import jax
import jax.numpy as jnp
from jax.experimental import pallas as pl
from jax.experimental.pallas import tpu as pltpu


def _margin_kernel(labels_ref, logits_ref, out_ref, *, s, m1, m2, m3,
                   threshold, tile_c):
    """One (tile_b, tile_c) block of the filter + margin transform.

    labels_ref : (tile_b, 1)       int32 (VMEM)
    logits_ref : (tile_b, tile_c)  f32/bf16 (VMEM)
    out_ref    : (tile_b, tile_c)  f32/bf16 (VMEM)
    """
    j = pl.program_id(1)
    x = logits_ref[...].astype(jnp.float32)               # (tb, tc)
    labels = labels_ref[...]                               # (tb, 1) int32

    # Fold this tile's column offset into the (tb, 1) labels instead of adding
    # it to the (tb, tc) iota: scalar-broadcast add on a tiny vreg.
    local_label = labels - j * tile_c                      # (tb, 1)
    col = jax.lax.broadcasted_iota(jnp.int32, x.shape, 1)  # (tb, tc)
    is_target = jnp.logical_and(col == local_label, labels != -1)

    if threshold > 0.0:
        # Interclass filtering: zero logits above the threshold, except the
        # target column of labeled rows.
        dirty = jnp.logical_and(x > jnp.float32(threshold),
                                jnp.logical_not(is_target))
        x = jnp.where(dirty, jnp.float32(0.0), x)

    if s == 1:
        # PyTorch returns the (filtered) logits without margin or scale.
        out = x
    elif m1 == 1.0 and m3 == 0.0:
        # ArcFace: cos(arccos(x) + m2), applied only at the target column.
        cos_m = jnp.float32(math.cos(m2))
        sin_m = jnp.float32(math.sin(m2))
        sin_theta = jnp.sqrt(jnp.maximum(jnp.float32(1.0) - x * x,
                                         jnp.float32(0.0)))
        margined = x * cos_m - sin_theta * sin_m
        out = jnp.where(is_target, margined, x) * jnp.float32(s)
    elif m3 > 0.0:
        # CosFace: subtract additive margin m3 at the target column only.
        out = jnp.where(is_target, x - jnp.float32(m3), x) * jnp.float32(s)
    else:
        raise ValueError("unsupported margin configuration (matches PyTorch `raise`)")

    out_ref[...] = out.astype(out_ref.dtype)


def _round_up(x, m):
    return ((x + m - 1) // m) * m


def _round_down(x, m):
    return (x // m) * m


def _pick_tiles(B, C, itemsize):
    """Lane-dense ~4 MiB blocks; widen C first when B is small."""
    sub = 16 if itemsize == 2 else 8                # bf16 packs 2 rows/sublane
    target_elems = (4 * 1024 * 1024) // itemsize    # ~4 MiB per block

    tile_c = min(_round_up(C, 128), 8192)
    tile_b = min(_round_up(B, sub), 1024,
                 max(sub, _round_down(target_elems // tile_c, sub)))
    # Small B: spend the budget on width so every vst stays lane-dense.
    tile_c = min(_round_up(C, 128),
                 max(128, _round_down(target_elems // tile_b, 128)))

    # Keep the grid non-degenerate so both v7x TensorCores get work via the
    # "parallel" dims.  On 1-TC v5e/v6e this only adds one ~0.35 us grid step.
    # Prefer splitting along B (keeps the widest lane-dense output tile).
    if pl.cdiv(B, tile_b) == 1 and pl.cdiv(C, tile_c) == 1:
        if tile_b >= 2 * sub:
            tile_b = _round_up(tile_b // 2, sub)
        elif tile_c > 128:
            tile_c = max(128, _round_up(tile_c // 2, 128))
    return tile_b, tile_c


def combined_margin_loss(logits, labels, *, s=64.0, m1=1.0, m2=0.5, m3=0.0,
                         interclass_filtering_threshold=0.0):
    """Pallas implementation of CombinedMarginLoss.forward."""
    B, C = logits.shape

    if s == 1 and interclass_filtering_threshold <= 0:
        # PyTorch early-returns the raw logits (no filtering, margin, or scale).
        return logits

    itemsize = jnp.dtype(logits.dtype).itemsize
    tile_b, tile_c = _pick_tiles(B, C, itemsize)
    grid = (pl.cdiv(B, tile_b), pl.cdiv(C, tile_c))

    labels_2d = labels.astype(jnp.int32).reshape(B, 1)

    # Generation-aware scoped-VMEM budget: blocks are <= 4 MiB, so the
    # double-buffered in+out footprint is ~16 MiB; cap at half of physical
    # VMEM (32 MiB on v7x, 64 MiB on v5e/v6e).
    try:
        vmem_cap = pltpu.get_tpu_info().vmem_capacity_bytes
    except Exception:  # most conservative assumption (v7x: 64 MiB physical)
        vmem_cap = 64 * 1024 * 1024
    vmem_limit = min(max(vmem_cap // 2, 16 * 1024 * 1024), 64 * 1024 * 1024)

    kernel = functools.partial(
        _margin_kernel, s=float(s), m1=float(m1), m2=float(m2), m3=float(m3),
        threshold=float(interclass_filtering_threshold), tile_c=tile_c)

    return pl.pallas_call(
        kernel,
        out_shape=jax.ShapeDtypeStruct((B, C), logits.dtype),
        grid=grid,
        in_specs=[
            # Tiny (tile_b, 1) label block, reused across the column axis.
            pl.BlockSpec((tile_b, 1), lambda i, j: (i, 0)),
            pl.BlockSpec((tile_b, tile_c), lambda i, j: (i, j)),
        ],
        out_specs=pl.BlockSpec((tile_b, tile_c), lambda i, j: (i, j)),
        # logits (input 1) aliases the output: pure in-place transform, lets
        # XLA reuse the [B, C] HBM allocation when the input is donated.
        input_output_aliases={1: 0},
        compiler_params=pltpu.CompilerParams(
            dimension_semantics=("parallel", "parallel"),
            vmem_limit_bytes=vmem_limit),
    )(labels_2d, logits)


def _reference(logits, labels, *, s, m1, m2, m3, thr=0.0):
    """Pure-JAX reference mirroring the PyTorch forward."""
    B, C = logits.shape
    onehot = jnp.logical_and(
        jax.lax.broadcasted_iota(jnp.int32, (B, C), 1) == labels[:, None],
        labels[:, None] != -1)
    if thr > 0:
        dirty = jnp.logical_and(logits > thr, jnp.logical_not(onehot))
        logits = jnp.where(dirty, 0.0, logits)
    if s == 1:
        return logits
    if m1 == 1.0 and m3 == 0.0:
        theta = jnp.arccos(logits) + jnp.where(onehot, m2, 0.0)
        return jnp.cos(theta) * s
    elif m3 > 0.0:
        return jnp.where(onehot, logits - m3, logits) * s
    else:
        raise ValueError


if __name__ == "__main__":
    # Deterministic synthetic inputs: normalized-embedding cosine similarities
    # (as partial_fc would feed this module), so logits lie in [-1, 1].
    key = jax.random.PRNGKey(0)
    k_emb, k_w, k_lab = jax.random.split(key, 3)

    B, D, C = 8, 32, 256            # batch, embedding dim, num classes
    emb = jax.random.normal(k_emb, (B, D), dtype=jnp.float32)
    weight = jax.random.normal(k_w, (C, D), dtype=jnp.float32)
    emb_n = emb / jnp.linalg.norm(emb, axis=1, keepdims=True)
    w_n = weight / jnp.linalg.norm(weight, axis=1, keepdims=True)
    logits = jnp.clip(emb_n @ w_n.T, -1.0, 1.0)        # [B, C]

    labels = jax.random.randint(k_lab, (B,), 0, C, dtype=jnp.int32)
    labels = labels.at[1].set(-1)                      # exercise the "no label" path

    # 1) ArcFace configuration (tile-aligned shape).
    out_arc = combined_margin_loss(logits, labels, s=64.0, m1=1.0, m2=0.5, m3=0.0)
    out_arc = jax.block_until_ready(out_arc)
    ref_arc = _reference(logits, labels, s=64.0, m1=1.0, m2=0.5, m3=0.0)
    assert out_arc.shape == (B, C) and out_arc.dtype == logits.dtype
    assert jnp.allclose(out_arc, ref_arc, atol=1e-3, rtol=1e-4)

    # 2) CosFace on a non-aligned shape (exercises ragged boundary tiles,
    #    masked stores, and OOB reads on the last row/column tiles).
    B2, C2 = 5, 200
    logits2 = logits[:B2, :C2]
    labels2 = jnp.clip(labels[:B2], -1, C2 - 1)
    out_cos = combined_margin_loss(logits2, labels2, s=30.0, m1=1.0, m2=0.0, m3=0.4)
    out_cos = jax.block_until_ready(out_cos)
    ref_cos = _reference(logits2, labels2, s=30.0, m1=1.0, m2=0.0, m3=0.4)
    assert out_cos.shape == (B2, C2)
    assert jnp.allclose(out_cos, ref_cos, atol=1e-3, rtol=1e-4)

    # 3) ArcFace with interclass filtering enabled.
    out_filt = combined_margin_loss(logits, labels, s=64.0, m1=1.0, m2=0.5, m3=0.0,
                                    interclass_filtering_threshold=0.2)
    out_filt = jax.block_until_ready(out_filt)
    ref_filt = _reference(logits, labels, s=64.0, m1=1.0, m2=0.5, m3=0.0, thr=0.2)
    assert jnp.allclose(out_filt, ref_filt, atol=1e-3, rtol=1e-4)

    print("KERNEL_OK")
</pallas_src>

<mosaic_0001>
module attributes {stable_mosaic.version = 11 : i64} {
  func.func @_margin_kernel(%arg0: i32, %arg1: i32, %arg2: memref<8x1xi32, #tpu.memory_space<vmem>>, %arg3: memref<8x128xf32, #tpu.memory_space<vmem>>, %arg4: memref<8x128xf32, #tpu.memory_space<vmem>>) attributes {dimension_semantics = [#tpu.dimension_semantics<parallel>, #tpu.dimension_semantics<parallel>], iteration_bounds = array<i64: 1, 2>, scalar_prefetch = 0 : i64, scratch_operands = 0 : i64, tpu.core_type = #tpu.core_type<tc>, window_params = [{transform_indices = @transform_0, window_bounds = array<i64: 8, 1>}, {transform_indices = @transform_1, window_bounds = array<i64: 8, 128>}, {transform_indices = @transform_2, window_bounds = array<i64: 8, 128>}]} {
    %c0 = arith.constant 0 : index
    %c0_0 = arith.constant 0 : index
    %0 = vector.load %arg3[%c0, %c0_0] : memref<8x128xf32, #tpu.memory_space<vmem>>, vector<8x128xf32>
    %c0_1 = arith.constant 0 : index
    %c0_2 = arith.constant 0 : index
    %1 = vector.load %arg2[%c0_1, %c0_2] : memref<8x1xi32, #tpu.memory_space<vmem>>, vector<8x1xi32>
    %c128_i32 = arith.constant 128 : i32
    %2 = arith.muli %arg1, %c128_i32 : i32
    %3 = vector.broadcast %2 : i32 to vector<8x1xi32>
    %4 = arith.subi %1, %3 : vector<8x1xi32>
    %5 = tpu.iota {dimensions = array<i32: 1>} : vector<8x128xi32>
    %6 = vector.broadcast %4 : vector<8x1xi32> to vector<8x128xi32>
    %7 = arith.cmpi eq, %5, %6 : vector<8x128xi32>
    %c-1_i32 = arith.constant -1 : i32
    %8 = vector.broadcast %c-1_i32 : i32 to vector<8x1xi32>
    %9 = arith.cmpi ne, %1, %8 : vector<8x1xi32>
    %10 = vector.broadcast %9 : vector<8x1xi1> to vector<8x128xi1>
    %11 = arith.andi %7, %10 : vector<8x128xi1>
    %12 = arith.mulf %0, %0 : vector<8x128xf32>
    %cst = arith.constant 1.000000e+00 : f32
    %13 = vector.broadcast %cst : f32 to vector<8x128xf32>
    %14 = arith.subf %13, %12 : vector<8x128xf32>
    %cst_3 = arith.constant 0.000000e+00 : f32
    %15 = vector.broadcast %cst_3 : f32 to vector<8x128xf32>
    %16 = arith.maximumf %14, %15 : vector<8x128xf32>
    %17 = math.sqrt %16 : vector<8x128xf32>
    %cst_4 = arith.constant 0.87758255 : f32
    %18 = vector.broadcast %cst_4 : f32 to vector<8x128xf32>
    %19 = arith.mulf %0, %18 : vector<8x128xf32>
    %cst_5 = arith.constant 0.47942555 : f32
    %20 = vector.broadcast %cst_5 : f32 to vector<8x128xf32>
    %21 = arith.mulf %17, %20 : vector<8x128xf32>
    %22 = arith.subf %19, %21 : vector<8x128xf32>
    %23 = arith.select %11, %22, %0 : vector<8x128xi1>, vector<8x128xf32>
    %cst_6 = arith.constant 6.400000e+01 : f32
    %24 = vector.broadcast %cst_6 : f32 to vector<8x128xf32>
    %25 = arith.mulf %23, %24 : vector<8x128xf32>
    %c0_7 = arith.constant 0 : index
    %c0_8 = arith.constant 0 : index
    %26 = vector.load %arg4[%c0_7, %c0_8] : memref<8x128xf32, #tpu.memory_space<vmem>>, vector<8x128xf32>
    tpu.vector_store %arg4[%c0_7, %c0_8], %25 {strides = array<i32>} : memref<8x128xf32, #tpu.memory_space<vmem>>, vector<8x128xf32>,
    return
  }
  func.func @transform_0(%arg0: i32, %arg1: i32) -> (i32, i32) {
    %c0_i32 = arith.constant 0 : i32
    %c0_i32_0 = arith.constant 0 : i32
    return %arg0, %c0_i32 : i32, i32
  }
  func.func @transform_1(%arg0: i32, %arg1: i32) -> (i32, i32) {
    %c0_i32 = arith.constant 0 : i32
    return %arg0, %arg1 : i32, i32
  }
  func.func @transform_2(%arg0: i32, %arg1: i32) -> (i32, i32) {
    %c0_i32 = arith.constant 0 : i32
    return %arg0, %arg1 : i32, i32
  }
}

</mosaic_0001>

<bundles_post_ra>
// kernel: tpu_custom_call.1
= control target key start
LH: loop header
LB: loop body
LE: loop exit
PB: predicated region body
PF: predicated region fallthrough
CT: control target
= control target key end

     0   :  { %7 = vsyncpa [#allocation3], 0  ;;  %s689_s0 = inlined_call_operand.vmem [shape: s32[8,1], index: 0, kind: input, shape index: {}]   ;;  %s690_s1 = inlined_call_operand.hbm [shape: f32[8,256], index: 1, kind: input, shape index: {}, may-alias: {1,2}]   ;;  %s691_s2 = inlined_call_operand.hbm [shape: f32[8,256], index: 2, kind: output, shape index: {}, may-alias: {1,2}]  }
   0x1   :  { %9 = vsyncpa [#allocation3 + $0x1], 0 }
   0x2   :  { %10 = vsyncpa [#allocation4], 0 }
   0x3   :  { %12 = vsyncpa [#allocation4 + $0x1], 0  ;;  %s561_s9 = smov 0   ;;  %s563_s10 = smov 0  }
   0x4   :  { %s565_s11 = smov 0   ;;  %s567_s12 = smov 0  }
   0x5   :  { %s569_s13 = smov 0   ;;  %s571_s14 = smov 0  }
   0x6 LB: > { %s350_s15 = sadd.s32 4294967295, %s543_s14   ;;  %s351_s16 = sadd.s32 4294967294, %s543_s14   ;;  %s543_s14 = sphi %s571_s14, %s18_s14   ;;  %s539_s13 = sphi %s569_s13, %s700_s13   ;;  %s535_s12 = sphi %s567_s12, %s699_s12   ;;  %s531_s11 = sphi %s565_s11, %s698_s11   ;;  %s527_s10 = sphi %s563_s10, %s697_s10   ;;  %s523_s9 = sphi %s561_s9, %s696_s9  }
   0x7   : > { %s27_s17 = sadd.s32 1, %s539_s13  ;;  %s65_s18 = sadd.s32 1, %s531_s11 }
   0x8   : > { %p28_p0 = scmp.ge.s32.totalorder %s27_s17, 2  ;;  %p72_p1 = scmp.ne.s32.totalorder %s531_s11, %s527_s10 }
   0x9   : > { %p73_p2 = scmp.eq.s32.totalorder %s543_s14, 0  ;;  %p78_p3 = scmp.ne.s32.totalorder %s527_s10, %s523_s9 }
   0xa   : > { %s702_s17 = smov (%p28_p0, %s27_s17), 0  ;;  %p79_p5 = scmp.eq.s32.totalorder %s350_s15, 0 }
   0xb   : > { %p602_p4 = por %p73_p2, %p72_p1  ;;  %s61_s20 = ssub.s32 %s539_s13, %s702_s17 }
   0xc   : > { %p104_p6 = scmp.eq.s32.totalorder %s350_s15, 1  ;;  %p63_p7 = scmp.eq.s32.totalorder %s61_s20, 0 }
   0xd   : > { %p608_p8 = por %p79_p5, %p78_p3  ;;  %p110_p10 = scmp.eq.s32.totalorder %s351_s16, 1 }
   0xe   : > { %p612_p9 = por %p104_p6, %p72_p1  ;;  %p354_p12 = scmp.ge.s32.totalorder %s543_s14, 2 }
   0xf   : > { %s617_s23 = scalar_select %p63_p7, %s531_s11, %s65_s18  }
  0x10   : > { %p619_p11 = por %p110_p10, %p78_p3  ;;  %p377_p13 = scmp.lt.s32.totalorder %s543_s14, 2 }
  0x11   : > { %s137_s25 = sand.u32 1, %s531_s11   ;;  %s356_s27 = sshll.u32 %s539_s13, 3 }
  0x12   : > { %s355_s26 = sshll.u32 %s137_s25, 3  ;;  %s147_s30 = scalar_lea.hbm %s690_s1, %s356_s27 }
  0x13   : > { %s141_s3 = scalar_lea.vmem [#allocation2], %s355_s26  ;;  %s149_s5 = sshll.u32 %s147_s30, 4  ;;  %s150_s5 = int_to_ptr.hbm [resolvable:$true] %s149_s5 }
  0x14   : > { %s151_s4 = sshll.u32 %s141_s3, 4  ;;  %p370_p0 = pnand %p377_p13, %p602_p4  ;;  %s152_s4 = int_to_ptr.vmem [resolvable:$true] %s151_s4 }
  0x15   : > { %p357_p1 = scmp.ge.s32.totalorder %s543_s14, 1  ;;  %p156_p2 = scmp.lt.s32.totalorder %s543_s14, 3 }
  0x16   : > { %s138_s6 = scalar_lea.sflag [#allocation3], %s137_s25 }
  0x17   : > { %372 = dma.hbm_to_vmem [thread:$0]  (!%p370_p0), %s150_s5, 128, %s152_s4, %s138_s6  }
  0x18   : > { %p157_p3 = pnand %p357_p1, %p156_p2 }
  0x19   : > { %s635_s7 = sand.u32 (!%p157_p3), 1, %s527_s10  }
  0x1a   : > { %160 = sbr.rel (%p157_p3) target bundleno = 167 (0xa7), region = 28  ;;  %s358_s8 = sshll.u32 (!%p157_p3), %s635_s7, 3 }
  0x1b   : > { %s163_s15 = scalar_lea.sflag (!%p157_p3), [#allocation3], %s635_s7  ;;  %s166_s16 = scalar_lea.vmem (!%p157_p3), [#allocation2], %s358_s8 }
  0x1f   : > { %514 = dma.done.wait (%p608_p8), %s163_s15, 128  }
  0x20   : > { %516 = vsyncadd (%p608_p8), %s163_s15, 4294967168  ;;  %v545_v0 = vmov 0   ;;  %s360_s18 = sshll.u32 %s535_s12, 7  ;;  %v197_v2 = vld [vmem:[%s689_s0] sm:$0xff]  ;;  %v201_v20 = vlaneseq  ;;  %s362_s21 = sshll.u32 %s535_s12, 3 }
  0x21   : > { %428 = vset.pattern.permute.xlu0 %v545_v0  ;;  %v199_v1 = vstv %s360_s18  ;;  %vm207_vm0 = vcmp.ne.s32.totalorder %v197_v2, 4294967295  ;;  %v196_v5 = vld [vmem:[%s166_s16] sm:$0xff]  ;;  %s248_s27 = scalar_lea.hbm %s691_s2, %s362_s21  ;;  %s191_s28 = scalar_lea.vmem [#allocation5], %s358_s8 }
  0x22   : > { %v200_v3 = vsub.s32 %v197_v2, %v199_v1  ;;  %v208_v4 = vsel %vm207_vm0, 1, %v545_v0  ;;  %v214_v6 = vmul.f32 %v196_v5, %v196_v5  ;;  %v229_v21 = vmul.f32 0.87758255, %v196_v5  ;;  %s250_s29 = sshll.u32 %s191_s28, 4  ;;  %s252_s30 = sshll.u32 %s248_s27, 4  ;;  %s251_s29 = int_to_ptr.vmem [resolvable:$true] %s250_s29  ;;  %s253_s30 = int_to_ptr.hbm [resolvable:$true] %s252_s30 }
  0x23   : > { %v202_v23 = vand.u32 127, %v201_v20  ;;  %s236_s12 = scalar_lea.sflag [#allocation4], %s635_s7  ;;  %s475_s3 = sshra.s32 %s253_s30, 4  ;;  %s476_s3 = int_to_ptr.hbm [resolvable:$true] %s475_s3 }
  0x24   : > { %204 = vperm.xlu0 %428, %v200_v3   ;;  %v215_v7 = vsub.f32 1.0, %v214_v6  ;;  %s477_s4 = scalar_lea.hbm %s476_s3, 8  ;;  %s481_s8 = scalar_lea.hbm %s691_s2, 16 }
  0x25   : > { %p478_p4 = scmp.ne.s32.totalorder %s476_s3, %s477_s4  ;;  %p482_p7 = scmp.lt.s32.totalorder %s476_s3, %s691_s2 }
  0x26   : > { %v216_v8 = vmax.f32 %v215_v7, 0.0  ;;  %p483_p8 = scmp.lt.s32.totalorder %s481_s8, %s477_s4 }
  0x27   : > { %p479_p5 = pnand %p478_p4, %p612_p9 }
  0x28   : > { %429 = vrsqrt.f32 %v216_v8  ;;  %vm224_vm1 = vcmp.eq.f32.partialorder %v216_v8, inf  ;;  %v227_v16 = vand.u32 2147483648, %v216_v8  ;;  %vm226_vm2 = vcmp.eq.f32.partialorder %v216_v8, 0.0  ;;  %p484_p10 = por %p483_p8, %p482_p7 }
  0x29   : > { %p480_p6 = pneg %p479_p5 }
  0x2b   : > { %p485_p13 = pnand %p484_p10, %p480_p6 }
  0x2c   : > { %210 = vperm.xlu0 %428, %v208_v4  }
  0x2e   : > { %v430_v9 = vpop.eup %429 }
  0x2f   : > { %v218_v10 = vmul.f32 %v430_v9, %v216_v8 }
  0x31   : > { %v219_v11 = vmul.f32 %v430_v9, %v218_v10 }
  0x33   : > { %v220_v12 = vmul.f32 0.5, %v219_v11 }
  0x35   : > { %v221_v13 = vsub.f32 1.5, %v220_v12 }
  0x37   : > { %v222_v14 = vmul.f32 %v430_v9, %v221_v13 }
  0x39   : > { %v223_v15 = vmul.f32 %v222_v14, %v216_v8 }
  0x3b   : > { %v225_v17 = vsel %vm224_vm1, %v216_v8, %v223_v15 }
  0x3c   : > { %v228_v19 = vsel %vm226_vm2, %v227_v16, %v225_v17 }
  0x3d   : > { %v230_v22 = vmul.f32 0.47942555, %v228_v19 }
  0x3f   : > { %v231_v24 = vsub.f32 %v229_v21, %v230_v22 }
  0x96   : > { %v205_v18 = vpop.permute.xlu0 %204 }
  0x97   : > { %vm206_vm3 = vcmp.eq.s32.totalorder %v202_v23, %v205_v18 }
  0x9e   : > { %v211_v25 = vpop.permute.xlu0 %210 }
  0x9f   : > { %vm212_vm4 = vcmp.eq.s32.totalorder %v211_v25, 1 }
  0xa0   : > { %vm213_vm5 = vmand %vm206_vm3, %vm212_vm4 }
  0xa1   : > { %v232_v26 = vsel %vm213_vm5, %v231_v24, %v196_v5 }
  0xa2   : > { %v233_v27 = vmul.f32 64.0, %v232_v26 }
  0xa4   : > { %234 = vst [vmem:[%s191_s28] sm:$0xff] %v233_v27 }
  0xa5   : > { %488 = shalt.err (!%p485_p13)
}
  0xa6   : > { %367 = dma.vmem_to_hbm [thread:$0]  (%p612_p9), %s251_s29, 128, %s253_s30, %s236_s12  }
  0xa7 PF: > { %s264_s7 = sand.u32 1, %s523_s9   ;;  %p374_p0 = pnand %p354_p12, %p619_p11 }
  0xa8   : > { %s265_s18 = scalar_lea.sflag [#allocation4], %s264_s7 }
  0xa9   : > { %p375_p1 = pneg %p374_p0 }
  0xab   : > { %518 = dma.done.wait (%p375_p1), %s265_s18, 128  }
  0xac   : > { %520 = vsyncadd (%p375_p1), %s265_s18, 4294967168  ;;  %s18_s14 = sadd.s32 1, %s543_s14   ;;  %s696_s9 = smov %s527_s10 }
  0xad   : > { %p15_p2 = scmp.ge.s32.totalorder %s18_s14, 4   ;;  %s697_s10 = smov %s531_s11 }
  0xae   : > { %s698_s11 = smov %s617_s23  ;;  %s699_s12 = smov %s539_s13 }
  0xaf   : > { %s700_s13 = smov %s702_s17  ;;  %17 = sbr.rel (!%p15_p2) target bundleno = 6 (0x6), region = 76 }
  0xb4   :  { %271 = vsyncpa [#allocation3], 1 }
  0xb5   :  { %273 = vsyncpa [#allocation3 + $0x1], 1 }
  0xb6   :  { %274 = vsyncpa [#allocation4], 1 }
  0xb7   :  { %276 = vsyncpa [#allocation4 + $0x1], 1 }

</bundles_post_ra>
